<compile_context>
chip_gen: v7x
topology: tpu7x:2x2x1
jax: 0.10.0
libtpu: 0.0.40
codegen_flags: <defaults>
</compile_context>

<pallas_src>
import functools
import math

import jax
import jax.numpy as jnp
from jax.experimental import pallas as pl
from jax.experimental.pallas import tpu as pltpu


def _attn_head_kernel(x_ref, w_ref, b_ref, o_ref, *, scale):
    bb, S, E = x_ref.shape
    H = w_ref.shape[1] // 3

    # Fused QKV projection: (bb*S, E) @ (E, 3H) + bias, ReLU.  bf16 operands,
    # f32 accumulation; elementwise math stays f32.
    x2d = x_ref[...].reshape(bb * S, E).astype(jnp.bfloat16)
    qkv = jnp.dot(x2d, w_ref[...], preferred_element_type=jnp.float32)
    qkv = jnp.maximum(qkv + b_ref[...], 0.0)                      # (bb*S, 3H) f32

    q = qkv[:, 0 * H:1 * H].reshape(bb, S, H).astype(jnp.bfloat16)
    k = qkv[:, 1 * H:2 * H].reshape(bb, S, H).astype(jnp.bfloat16)
    v = qkv[:, 2 * H:3 * H].reshape(bb, S, H).astype(jnp.bfloat16)

    # QK^T without an explicit transpose: contract the hidden dim of both.
    s = jnp.einsum('bqh,bkh->bqk', q, k,
                   preferred_element_type=jnp.float32) * scale    # (bb, S, S) f32

    # Dropout is identity in eval mode.

    # Softmax over torch dim=1 (query axis -> axis 1 here).
    m0 = jnp.max(s, axis=1, keepdims=True)
    e0 = jnp.exp(s - m0)
    p0 = e0 * pl.reciprocal(jnp.sum(e0, axis=1, keepdims=True), approx=True)

    # Softmax over torch dim=2 (key axis).  p0 is in [0,1], so the max
    # subtraction is unnecessary (exp is already bounded by e).
    e1 = jnp.exp(p0)
    p1 = e1 * pl.reciprocal(jnp.sum(e1, axis=2, keepdims=True), approx=True)

    # Z = QKs @ V : (bb, S, S) @ (bb, S, H) -> (bb, S, H)
    z = jnp.einsum('bqk,bkh->bqh', p1.astype(jnp.bfloat16), v,
                   preferred_element_type=jnp.float32)
    o_ref[...] = z.astype(o_ref.dtype)


def transformer_self_attention_head(x, wq, bq, wk, bk, wv, bv, *, block_b=None):
    """x: (B, S, E) f32;  wX: (E, H);  bX: (1, H).  Returns (B, S, H)."""
    B, S, E = x.shape
    H = wq.shape[1]

    # Fused projection parameters: weights in bf16 (MXU operands, half the
    # weight DMA), bias kept f32 (added after f32 accumulation).
    w_qkv = jnp.concatenate([wq, wk, wv], axis=1).astype(jnp.bfloat16)  # (E, 3H)
    b_qkv = jnp.concatenate([bq, bk, bv], axis=1).astype(jnp.float32)   # (1, 3H)

    if block_b is None:
        # Largest divisor of B that is <= 8: collapses tiny batches into a
        # single grid step; larger batches get a multi-step parallel grid.
        block_b = next(d for d in range(min(B, 8), 0, -1) if B % d == 0)
    assert B % block_b == 0, "block_b must divide B"
    grid = (B // block_b,)

    kernel = functools.partial(_attn_head_kernel,
                               scale=1.0 / math.sqrt(float(E)))

    return pl.pallas_call(
        kernel,
        out_shape=jax.ShapeDtypeStruct((B, S, H), x.dtype),
        grid=grid,
        in_specs=[
            pl.BlockSpec((block_b, S, E), lambda b: (b, 0, 0)),
            pl.BlockSpec((E, 3 * H), lambda b: (0, 0)),
            pl.BlockSpec((1, 3 * H), lambda b: (0, 0)),
        ],
        out_specs=pl.BlockSpec((block_b, S, H), lambda b: (b, 0, 0)),
        compiler_params=pltpu.CompilerParams(
            dimension_semantics=("parallel",)),
    )(x, w_qkv, b_qkv)


def _reference(x, wq, bq, wk, bk, wv, bv):
    """Pure-JAX f32 reference matching the PyTorch forward (eval mode)."""
    E = x.shape[-1]
    q = jax.nn.relu(jnp.einsum("bse,eh->bsh", x, wq) + bq)
    k = jax.nn.relu(jnp.einsum("bse,eh->bsh", x, wk) + bk)
    v = jax.nn.relu(jnp.einsum("bse,eh->bsh", x, wv) + bv)
    qk = jnp.einsum("bqh,bkh->bqk", q, k)
    qks = jax.nn.softmax(qk / math.sqrt(float(E)), axis=1)
    qks = jax.nn.softmax(qks, axis=2)
    return jnp.einsum("bqk,bkh->bqh", qks, v)


if __name__ == "__main__":
    B, S, E, H = 2, 8, 32, 32

    key = jax.random.PRNGKey(0)
    kx, kwq, kbq, kwk, kbk, kwv, kbv = jax.random.split(key, 7)

    # Deterministic parameter init (PyTorch Linear uses uniform(-1/sqrt(E), 1/sqrt(E))).
    bound = 1.0 / math.sqrt(E)
    x = jax.random.normal(kx, (B, S, E), dtype=jnp.float32)
    wq = jax.random.uniform(kwq, (E, H), jnp.float32, -bound, bound)
    wk = jax.random.uniform(kwk, (E, H), jnp.float32, -bound, bound)
    wv = jax.random.uniform(kwv, (E, H), jnp.float32, -bound, bound)
    bq = jax.random.uniform(kbq, (1, H), jnp.float32, -bound, bound)
    bk = jax.random.uniform(kbk, (1, H), jnp.float32, -bound, bound)
    bv = jax.random.uniform(kbv, (1, H), jnp.float32, -bound, bound)

    out = transformer_self_attention_head(x, wq, bq, wk, bk, wv, bv)
    out = jax.block_until_ready(out)

    ref = _reference(x, wq, bq, wk, bk, wv, bv)
    assert out.shape == (B, S, H)
    # bf16 MXU operands (f32 accumulation) => loosened tolerance vs f32 reference.
    assert jnp.allclose(out, ref, atol=5e-2, rtol=5e-2), "mismatch vs reference"

    print("KERNEL_OK")
</pallas_src>

<mosaic_0001>
module attributes {stable_mosaic.version = 11 : i64} {
  func.func @_attn_head_kernel(%arg0: i32, %arg1: memref<2x8x32xf32, #tpu.memory_space<vmem>>, %arg2: memref<32x96xbf16, #tpu.memory_space<vmem>>, %arg3: memref<1x96xf32, #tpu.memory_space<vmem>>, %arg4: memref<2x8x32xf32, #tpu.memory_space<vmem>>) attributes {dimension_semantics = [#tpu.dimension_semantics<parallel>], iteration_bounds = array<i64: 1>, scalar_prefetch = 0 : i64, scratch_operands = 0 : i64, tpu.core_type = #tpu.core_type<tc>, window_params = [{transform_indices = @transform_0, window_bounds = array<i64: 2, 8, 32>}, {pipeline_mode = #tpu.pipeline_mode<synchronous>, transform_indices = @transform_1, window_bounds = array<i64: 32, 96>}, {pipeline_mode = #tpu.pipeline_mode<synchronous>, transform_indices = @transform_2, window_bounds = array<i64: 1, 96>}, {transform_indices = @transform_3, window_bounds = array<i64: 2, 8, 32>}]} {
    %c0 = arith.constant 0 : index
    %c0_0 = arith.constant 0 : index
    %c0_1 = arith.constant 0 : index
    %0 = vector.load %arg1[%c0, %c0_0, %c0_1] : memref<2x8x32xf32, #tpu.memory_space<vmem>>, vector<2x8x32xf32>
    %1 = vector.shape_cast %0 : vector<2x8x32xf32> to vector<16x32xf32>
    %2 = arith.truncf %1 : vector<16x32xf32> to vector<16x32xbf16>
    %c0_2 = arith.constant 0 : index
    %c0_3 = arith.constant 0 : index
    %3 = vector.load %arg2[%c0_2, %c0_3] : memref<32x96xbf16, #tpu.memory_space<vmem>>, vector<32x96xbf16>
    %cst = arith.constant dense<0.000000e+00> : vector<16x96xf32>
    %4 = tpu.matmul %2, %3, %cst {dimension_numbers = #tpu.dot_dimension_numbers<[1], [0], [0], [1], [0, 0, 1, 1], [], []>} : vector<16x32xbf16>, vector<32x96xbf16>, vector<16x96xf32> -> vector<16x96xf32>
    %c0_4 = arith.constant 0 : index
    %c0_5 = arith.constant 0 : index
    %5 = vector.load %arg3[%c0_4, %c0_5] : memref<1x96xf32, #tpu.memory_space<vmem>>, vector<1x96xf32>
    %6 = vector.broadcast %5 : vector<1x96xf32> to vector<16x96xf32>
    %7 = arith.addf %4, %6 : vector<16x96xf32>
    %cst_6 = arith.constant 0.000000e+00 : f32
    %8 = vector.broadcast %cst_6 : f32 to vector<16x96xf32>
    %9 = arith.maximumf %7, %8 : vector<16x96xf32>
    %10 = vector.extract_strided_slice %9 {offsets = [0, 0], sizes = [16, 32], strides = [1, 1]} : vector<16x96xf32> to vector<16x32xf32>
    %11 = vector.shape_cast %10 : vector<16x32xf32> to vector<2x8x32xf32>
    %12 = arith.truncf %11 : vector<2x8x32xf32> to vector<2x8x32xbf16>
    %13 = vector.extract_strided_slice %9 {offsets = [0, 32], sizes = [16, 32], strides = [1, 1]} : vector<16x96xf32> to vector<16x32xf32>
    %14 = vector.shape_cast %13 : vector<16x32xf32> to vector<2x8x32xf32>
    %15 = arith.truncf %14 : vector<2x8x32xf32> to vector<2x8x32xbf16>
    %16 = vector.extract_strided_slice %9 {offsets = [0, 64], sizes = [16, 32], strides = [1, 1]} : vector<16x96xf32> to vector<16x32xf32>
    %17 = vector.shape_cast %16 : vector<16x32xf32> to vector<2x8x32xf32>
    %18 = arith.truncf %17 : vector<2x8x32xf32> to vector<2x8x32xbf16>
    "tpu.trace_start"() <{level = 10 : i32, message = "bqh,bkh->bqk"}> : () -> ()
    %cst_7 = arith.constant dense<0.000000e+00> : vector<2x8x8xf32>
    %19 = tpu.matmul %12, %15, %cst_7 {dimension_numbers = #tpu.dot_dimension_numbers<[2], [2], [1], [1], [0, 0, 0, 1, 1, 1], [0], [0]>} : vector<2x8x32xbf16>, vector<2x8x32xbf16>, vector<2x8x8xf32> -> vector<2x8x8xf32>
    "tpu.trace_stop"() : () -> ()
    %cst_8 = arith.constant 0.176776692 : f32
    %20 = vector.broadcast %cst_8 : f32 to vector<2x8x8xf32>
    %21 = arith.mulf %19, %20 : vector<2x8x8xf32>
    %cst_9 = arith.constant dense<0xFF800000> : vector<2x8xf32>
    %22 = vector.multi_reduction <maximumf>, %21, %cst_9 [1] : vector<2x8x8xf32> to vector<2x8xf32>
    %23 = vector.shape_cast %22 : vector<2x8xf32> to vector<2x1x8xf32>
    %24 = vector.broadcast %23 : vector<2x1x8xf32> to vector<2x8x8xf32>
    %25 = arith.subf %21, %24 : vector<2x8x8xf32>
    %26 = math.exp %25 : vector<2x8x8xf32>
    %cst_10 = arith.constant dense<0.000000e+00> : vector<2x8xf32>
    %27 = vector.multi_reduction <add>, %26, %cst_10 [1] : vector<2x8x8xf32> to vector<2x8xf32>
    %28 = vector.shape_cast %27 : vector<2x8xf32> to vector<2x1x8xf32>
    %29 = tpu.reciprocal %28 {approx = true} : vector<2x1x8xf32> -> vector<2x1x8xf32>
    %30 = vector.broadcast %29 : vector<2x1x8xf32> to vector<2x8x8xf32>
    %31 = arith.mulf %26, %30 : vector<2x8x8xf32>
    %32 = math.exp %31 : vector<2x8x8xf32>
    %cst_11 = arith.constant dense<0.000000e+00> : vector<2x8xf32>
    %33 = vector.multi_reduction <add>, %32, %cst_11 [2] : vector<2x8x8xf32> to vector<2x8xf32>
    %34 = vector.shape_cast %33 : vector<2x8xf32> to vector<2x8x1xf32>
    %35 = tpu.reciprocal %34 {approx = true} : vector<2x8x1xf32> -> vector<2x8x1xf32>
    %36 = vector.broadcast %35 : vector<2x8x1xf32> to vector<2x8x8xf32>
    %37 = arith.mulf %32, %36 : vector<2x8x8xf32>
    %38 = arith.truncf %37 : vector<2x8x8xf32> to vector<2x8x8xbf16>
    "tpu.trace_start"() <{level = 10 : i32, message = "bqk,bkh->bqh"}> : () -> ()
    %cst_12 = arith.constant dense<0.000000e+00> : vector<2x8x32xf32>
    %39 = tpu.matmul %38, %18, %cst_12 {dimension_numbers = #tpu.dot_dimension_numbers<[2], [1], [1], [2], [0, 0, 0, 1, 1, 2], [0], [0]>} : vector<2x8x8xbf16>, vector<2x8x32xbf16>, vector<2x8x32xf32> -> vector<2x8x32xf32>
    "tpu.trace_stop"() : () -> ()
    %c0_13 = arith.constant 0 : index
    %c0_14 = arith.constant 0 : index
    %c0_15 = arith.constant 0 : index
    %40 = vector.load %arg4[%c0_13, %c0_14, %c0_15] : memref<2x8x32xf32, #tpu.memory_space<vmem>>, vector<2x8x32xf32>
    tpu.vector_store %arg4[%c0_13, %c0_14, %c0_15], %39 {strides = array<i32>} : memref<2x8x32xf32, #tpu.memory_space<vmem>>, vector<2x8x32xf32>,
    return
  }
  func.func @transform_0(%arg0: i32) -> (i32, i32, i32) {
    %c0_i32 = arith.constant 0 : i32
    %c0_i32_0 = arith.constant 0 : i32
    %c0_i32_1 = arith.constant 0 : i32
    return %arg0, %c0_i32, %c0_i32_0 : i32, i32, i32
  }
  func.func @transform_1(%arg0: i32) -> (i32, i32) {
    %c0_i32 = arith.constant 0 : i32
    %c0_i32_0 = arith.constant 0 : i32
    %c0_i32_1 = arith.constant 0 : i32
    return %c0_i32, %c0_i32_0 : i32, i32
  }
  func.func @transform_2(%arg0: i32) -> (i32, i32) {
    %c0_i32 = arith.constant 0 : i32
    %c0_i32_0 = arith.constant 0 : i32
    %c0_i32_1 = arith.constant 0 : i32
    return %c0_i32, %c0_i32_0 : i32, i32
  }
  func.func @transform_3(%arg0: i32) -> (i32, i32, i32) {
    %c0_i32 = arith.constant 0 : i32
    %c0_i32_0 = arith.constant 0 : i32
    %c0_i32_1 = arith.constant 0 : i32
    return %arg0, %c0_i32, %c0_i32_0 : i32, i32, i32
  }
}

</mosaic_0001>

<bundles_post_ra>
// kernel: tpu_custom_call.1
= control target key start
LH: loop header
LB: loop body
LE: loop exit
PB: predicated region body
PF: predicated region fallthrough
CT: control target
= control target key end

     0   :  { %8 = vsyncpa [#allocation3], 0  ;;  %s648_s0 = inlined_call_operand.hbm [shape: f32[2,8,32], index: 0, kind: input, shape index: {}]   ;;  %s649_s1 = inlined_call_operand.hbm [shape: bf16[32,96], index: 1, kind: input, shape index: {}]   ;;  %s650_s2 = inlined_call_operand.vmem [shape: f32[1,96], index: 2, kind: input, shape index: {}]   ;;  %s651_s3 = inlined_call_operand.hbm [shape: f32[2,8,32], index: 3, kind: output, shape index: {}]  }
   0x1   :  { %9 = vsyncpa [#allocation6], 0 }
   0x2   :  { %10 = vsyncpa [#allocation4], 0  ;;  %s542_s12 = smov [#allocation2]   ;;  %s470_s16 = scalar_lea.hbm %s648_s0, 256 }
   0x3   :  { %s16_s13 = sshll.u32 %s542_s12, 4  ;;  %p471_p0 = scmp.ne.s32.totalorder %s648_s0, %s470_s16  ;;  %s17_s13 = int_to_ptr.vmem [resolvable:$true] %s16_s13 }
   0x4   :  { %p474_p1 = scmp.lt.u32.totalorder %s470_s16, %s648_s0 }
   0x6   :  { %p476_p2 = pnand %p474_p1, %p471_p0 }
   0x8   :  { %479 = shalt.err (!%p476_p2)
}
   0x9   :  { %s480_s21 = scalar_lea.vmem %s17_s13, 256  ;;  %p485_p4 = scmp.lt.s32.totalorder %s17_s13, %s17_s13 }
   0xa   :  { %p481_p3 = scmp.ne.s32.totalorder %s17_s13, %s480_s21  ;;  %p486_p5 = scmp.lt.s32.totalorder %s480_s21, %s480_s21 }
   0xc   :  { %p487_p6 = por %p486_p5, %p485_p4 }
   0xe   :  { %p488_p7 = pnand %p487_p6, %p481_p3 }
  0x10   :  { %491 = shalt.err (!%p488_p7)
}
  0x11   :  { %s543_s22 = smov 128   ;;  %s544_s23 = smov 8  }
  0x12   :  { %22 = dma.hbm_to_vmem [thread:$0]  %s648_s0, 256, %s17_s13, [#allocation3], %s543_s22, %s543_s22, %s544_s23  }
  0x13   :  { %s545_s26 = smov [#allocation5]   ;;  %s492_s30 = scalar_lea.hbm %s649_s1, 256 }
  0x14   :  { %s28_s27 = sshll.u32 %s545_s26, 4  ;;  %p493_p8 = scmp.ne.s32.totalorder %s649_s1, %s492_s30  ;;  %s29_s27 = int_to_ptr.vmem [resolvable:$true] %s28_s27 }
  0x15   :  { %p496_p9 = scmp.lt.u32.totalorder %s492_s30, %s649_s1 }
  0x17   :  { %p498_p10 = pnand %p496_p9, %p493_p8 }
  0x19   :  { %501 = shalt.err (!%p498_p10)
}
  0x1a   :  { %s502_s8 = scalar_lea.vmem %s29_s27, 256  ;;  %p507_p12 = scmp.lt.s32.totalorder %s29_s27, %s29_s27 }
  0x1b   :  { %p503_p11 = scmp.ne.s32.totalorder %s29_s27, %s502_s8  ;;  %p508_p13 = scmp.lt.s32.totalorder %s502_s8, %s502_s8 }
  0x1d   :  { %p509_p0 = por %p508_p13, %p507_p12 }
  0x1f   :  { %p510_p1 = pnand %p509_p0, %p503_p11 }
  0x21   :  { %513 = shalt.err (!%p510_p1)
}
  0x22   :  { %s546_s0 = smov 64   ;;  %s547_s9 = smov 4  }
  0x23   :  { %34 = dma.hbm_to_vmem [thread:$0]  %s649_s1, 256, %s29_s27, [#allocation6], %s546_s0, %s546_s0, %s547_s9  }
  0x24   :  { %536 = dma.done.wait [#allocation3], 256  }
  0x25   :  { %537 = vsyncadd [#allocation3], 4294967040 }
  0x26   :  { %538 = dma.done.wait [#allocation6], 256  }
  0x27   :  { %539 = vsyncadd [#allocation6], 4294967040  ;;  %v548_v0 = vmov 0.0   ;;  %vm549_vm0 = vmmov 0   ;;  %v452_v1 = vld [vmem:[#allocation5] sm:$0xff]   ;;  %v453_v2 = vld [vmem:[#allocation5 + $0x8] sm:$0xff]  }
  0x28   :  { %410 = vmatprep.subr.bf16.mxu0 %v548_v0  ;;  %414 = vmatprep.mubr.msk.bf16.mxu0 %vm549_vm0, %v548_v0  ;;  %v44_v3 = vld [vmem:[#allocation2] sm:$0xff]  ;;  %v45_v4 = vld [vmem:[#allocation2 + $0x8] sm:$0xff]  ;;  %vm70_vm1 = vcmask 261120   ;;  %s550_s13 = smov 96   ;;  %vm279_vm2 = vcmask 1043456   ;;  %vm219_vm3 = vcmask 64512  }
  0x29   :  { %418 = vmatprep.subr.bf16.mxu1 %v548_v0  ;;  %420 = vmatprep.mubr.msk.bf16.mxu1 %vm549_vm0, %v548_v0  ;;  %v46_v5 = vpack.c.bf16 %v45_v4, %v44_v3  ;;  %v391_v6 = vld [vmem:[%s650_s2] ss:$0 sm:$0xff]  ;;  %s551_s2 = smov [#allocation7]  }
  0x2a   :  { %411 = vmatpush3.bf16.msra.mxu0 %v452_v1  ;;  %s378_s14 = sshll.u32 %s551_s2, 4  ;;  %s379_s14 = int_to_ptr.vmem [resolvable:$true] %s378_s14 }
  0x2b   :  { %412 = vmatprep.subr.bf16.mxu0 %v548_v0  ;;  %s514_s15 = scalar_lea.vmem %s379_s14, 256  ;;  %p519_p3 = scmp.lt.s32.totalorder %s379_s14, %s379_s14 }
  0x2c   :  { %p515_p2 = scmp.ne.s32.totalorder %s379_s14, %s514_s15  ;;  %p520_p4 = scmp.lt.s32.totalorder %s514_s15, %s514_s15 }
  0x2e   :  { %413 = vmatpush3.bf16.msra.mxu0 %v453_v2  ;;  %p521_p5 = por %p520_p4, %p519_p3 }
  0x2f   :  { %424 = vmatprep.subr.bf16.mxu0 %v548_v0 }
  0x30   :  { %p522_p6 = pnand %p521_p5, %p515_p2 }
  0x31   :  { %415 = vmatmul.mubr.msk.bf16.vlgmr.msra.gmra.mrb[0].mxu0 %vm70_vm1, %v46_v5 }
  0x32   :  { %426 = vmatprep.mubr.msk.bf16.mxu0 %vm549_vm0, %v548_v0 }
 0x104   :  { %v108_v7 = vpop.f32.mrb[0].mxu0 }
 0x105   :  { %v109_v8 = vadd.f32 %v391_v6, %v108_v7  ;;  %v416_v9 = vpop.f32.mrb[1].mxu0 }
 0x106   :  { %v111_v10 = vpop.f32.mrb[2].mxu0 }
 0x107   :  { %v115_v11 = vmax.f32 %v109_v8, 0.0  ;;  %v112_v12 = vadd.f32 %v391_v6, %v111_v10  ;;  %v417_v13 = vpop.f32.mrb[3].mxu0 }
 0x109   :  { %v117_v14 = vpack.c.bf16 %v115_v11, %v115_v11  ;;  %v116_v15 = vmax.f32 %v112_v12, 0.0 }
 0x10b   :  { %120 = vrot.lane.b32.xlu0 %v117_v14, %s550_s13  ;;  %v608_v16 = vpack.c.bf16 %v116_v15, %v116_v15 }
 0x10f   :  { %169 = vrot.lane.b32.xlu0 %v608_v16, %s550_s13 }
 0x113   :  { %274 = vrot.lane.b32.xlu0 %v117_v14, %s546_s0 }
 0x17d   :  { %v121_v17 = vpop.permute.xlu0 %120 }
 0x17e   :  { %v126_v18 = vsel %vm70_vm1, %v121_v17, 0 }
 0x17f   :  { %419 = vmatpush3.bf16.xpose.msra.mxu1 %v126_v18 }
 0x180   :  { %430 = vmatprep.subr.bf16.mxu1 %v548_v0 }
 0x181   :  { %v170_v19 = vpop.permute.xlu0 %169 }
 0x182   :  { %v175_v20 = vsel %vm70_vm1, %v170_v19, 0 }
 0x183   :  { %425 = vmatpush3.bf16.xpose.msra.mxu0 %v175_v20 }
 0x184   :  { %436 = vmatprep.subr.bf16.mxu0 %v548_v0 }
 0x185   :  { %v275_v21 = vpop.permute.xlu0 %274 }
 0x186   :  { %v281_v22 = vsel %vm279_vm2, %v275_v21, 0  ;;  %421 = vmatmul.mubr.msk.bf16.vlgmr.msra.gmra.mrb[0].mxu1 %vm70_vm1, %v117_v14 }
 0x187   :  { %431 = vmatpush3.bf16.msra.mxu1 %v281_v22  ;;  %432 = vmatprep.mubr.msk.bf16.mxu1 %vm549_vm0, %v548_v0 }
 0x18a   :  { %427 = vmatmul.mubr.msk.bf16.vlgmr.msra.gmra.mrb[4].mxu0 %vm70_vm1, %v608_v16 }
 0x18b   :  { %438 = vmatprep.mubr.msk.bf16.mxu0 %vm549_vm0, %v548_v0 }
 0x259   :  { %v162_v23 = vpop.f32.mrb[0].mxu1 }
 0x25a   :  { %v217_v24 = vmul.f32 0.17677669, %v162_v23  ;;  %v422_v25 = vpop.f32.mrb[1].mxu1 }
 0x25b   :  { %v165_v26 = vpop.f32.mrb[2].mxu1 }
 0x25c   :  { %v220_v27 = vsel %vm219_vm3, %v217_v24, -inf  ;;  %v423_v28 = vpop.f32.mrb[3].mxu1 }
 0x25d   :  { %v221_v29 = vrot.slane %v220_v27, 4  ;;  %v211_v30 = vpop.f32.mrb[4].mxu0 }
 0x25e   :  { %v218_v31 = vmul.f32 0.17677669, %v211_v30  ;;  %v428_v32 = vpop.f32.mrb[5].mxu0 }
 0x25f   :  { %v222_v33 = vmax.f32 %v220_v27, %v221_v29  ;;  %v214_v34 = vpop.f32.mrb[6].mxu0 }
 0x260   :  { %v227_v35 = vsel %vm219_vm3, %v218_v31, -inf  ;;  %v429_v36 = vpop.f32.mrb[7].mxu0 }
 0x261   :  { %v223_v37 = vrot.slane %v222_v33, 2  ;;  %v228_v38 = vrot.slane %v227_v35, 4 }
 0x263   :  { %v224_v39 = vmax.f32 %v222_v33, %v223_v37  ;;  %v229_v40 = vmax.f32 %v227_v35, %v228_v38 }
 0x265   :  { %v225_v41 = vrot.slane %v224_v39, 1  ;;  %v230_v42 = vrot.slane %v229_v40, 2 }
 0x267   :  { %v226_v43 = vmax.f32 %v224_v39, %v225_v41  ;;  %v231_v44 = vmax.f32 %v229_v40, %v230_v42 }
 0x269   :  { %v234_v45 = vsub.f32 %v217_v24, %v226_v43  ;;  %v232_v46 = vrot.slane %v231_v44, 1 }
 0x26b   :  { %v236_v47 = vmul.f32 1.442695, %v234_v45  ;;  %v233_v48 = vmax.f32 %v231_v44, %v232_v46 }
 0x26d   :  { %454 = vpow2.f32 %v236_v47  ;;  %v235_v49 = vsub.f32 %v218_v31, %v233_v48 }
 0x26f   :  { %v238_v50 = vmul.f32 1.442695, %v235_v49 }
 0x271   :  { %456 = vpow2.f32 %v238_v50 }
 0x277   :  { %v455_v51 = vpop.eup %454 }
 0x278   :  { %v240_v52 = vsel %vm219_vm3, %v455_v51, 0.0 }
 0x279   :  { %v241_v53 = vrot.slane %v240_v52, 4 }
 0x27b   :  { %v457_v54 = vpop.eup %456  ;;  %v242_v55 = vadd.f32 %v241_v53, %v240_v52 }
 0x27c   :  { %v247_v56 = vsel %vm219_vm3, %v457_v54, 0.0 }
 0x27d   :  { %v243_v57 = vrot.slane %v242_v55, 2  ;;  %v248_v58 = vrot.slane %v247_v56, 4 }
 0x27f   :  { %v244_v59 = vadd.f32 %v243_v57, %v242_v55  ;;  %v249_v60 = vadd.f32 %v248_v58, %v247_v56 }
 0x281   :  { %v245_v61 = vrot.slane %v244_v59, 1  ;;  %v250_v62 = vrot.slane %v249_v60, 2 }
 0x283   :  { %v246_v63 = vadd.f32 %v245_v61, %v244_v59  ;;  %v251_v0 = vadd.f32 %v250_v62, %v249_v60 }
 0x285   :  { %458 = vrcp.f32 %v246_v63  ;;  %v252_v1 = vrot.slane %v251_v0, 1 }
 0x287   :  { %v253_v2 = vadd.f32 %v252_v1, %v251_v0 }
 0x289   :  { %460 = vrcp.f32 %v253_v2 }
 0x28f   :  { %v459_v3 = vpop.eup %458 }
 0x290   :  { %v256_v4 = vmul.f32 %v459_v3, %v455_v51 }
 0x292   :  { %v258_v5 = vmul.f32 1.442695, %v256_v4 }
 0x293   :  { %v461_v6 = vpop.eup %460 }
 0x294   :  { %462 = vpow2.f32 %v258_v5  ;;  %v257_v7 = vmul.f32 %v461_v6, %v457_v54 }
 0x296   :  { %v260_v8 = vmul.f32 1.442695, %v257_v7 }
 0x298   :  { %464 = vpow2.f32 %v260_v8 }
 0x29e   :  { %v463_v9 = vpop.eup %462 }
 0x29f   :  { %v262_v10 = vsel %vm219_vm3, %v463_v9, 0.0 }
 0x2a0   :  { %263 = vadd.xlane.f32.xlu1 %v262_v10 }
 0x2a2   :  { %v465_v11 = vpop.eup %464 }
 0x2a3   :  { %v265_v12 = vsel %vm219_vm3, %v465_v11, 0.0 }
 0x2a4   :  { %266 = vadd.xlane.f32.xlu1 %v265_v12 }
 0x2b5   :  { %323 = vrot.lane.b32.xlu1 %v608_v16, %s546_s0 }
 0x32d   :  { %v264_v13 = vpop.xlane.xlu1 %263 }
 0x32e   :  { %466 = vrcp.f32 %v264_v13 }
 0x331   :  { %v267_v14 = vpop.xlane.xlu1 %266 }
 0x332   :  { %468 = vrcp.f32 %v267_v14 }
 0x335   :  { %v324_v15 = vpop.permute.xlu1 %323 }
 0x336   :  { %v329_v17 = vsel %vm279_vm2, %v324_v15, 0 }
 0x337   :  { %437 = vmatpush3.bf16.msra.mxu0 %v329_v17 }
 0x338   :  { %v467_v18 = vpop.eup %466 }
 0x339   :  { %v270_v19 = vmul.f32 %v467_v18, %v463_v9 }
 0x33b   :  { %v272_v20 = vpack.c.bf16 %v270_v19, %v270_v19 }
 0x33c   :  { %v469_v21 = vpop.eup %468 }
 0x33d   :  { %v271_v22 = vmul.f32 %v469_v21, %v465_v11  ;;  %433 = vmatmul.mubr.msk.bf16.vlgmr.msra.gmra.mrb[4].mxu1 %vm219_vm3, %v272_v20 }
 0x33f   :  { %v273_v23 = vpack.c.bf16 %v271_v22, %v271_v22 }
 0x341   :  { %439 = vmatmul.mubr.msk.bf16.vlgmr.msra.gmra.mrb[8].mxu0 %vm219_vm3, %v273_v23 }
 0x410   :  { %v317_v24 = vpop.f32.mrb[4].mxu1 }
 0x411   :  { %371 = vst.msk [vmem:[#allocation7] sm:$0xff] %vm70_vm1, %v317_v24  ;;  %v434_v16 = vpop.f32.mrb[5].mxu1 }
 0x412   :  { %v320_v25 = vpop.f32.mrb[6].mxu1 }
 0x413   :  { %v435_v26 = vpop.f32.mrb[7].mxu1 }
 0x414   :  { %v365_v27 = vpop.f32.mrb[8].mxu0 }
 0x415   :  { %372 = vst.msk [vmem:[#allocation7 + $0x8] sm:$0xff] %vm70_vm1, %v365_v27  ;;  %v440_v28 = vpop.f32.mrb[9].mxu0 }
 0x416   :  { %v368_v29 = vpop.f32.mrb[10].mxu0 }
 0x417   :  { %525 = shalt.err (!%p522_p6)
}
 0x418   :  { %s526_s18 = scalar_lea.hbm %s651_s3, 256 }
 0x419   :  { %p527_p7 = scmp.ne.s32.totalorder %s651_s3, %s526_s18  ;;  %p530_p8 = scmp.lt.u32.totalorder %s526_s18, %s651_s3 }
 0x41b   :  { %p532_p9 = pnand %p530_p8, %p527_p7 }
 0x41d   :  { %535 = shalt.err (!%p532_p9)
}
 0x41e   :  { %384 = dma.vmem_to_hbm [thread:$0]  %s379_s14, 256, %s651_s3, [#allocation4], %s543_s22, %s543_s22, %s544_s23   ;;  %v441_v30 = vpop.f32.mrb[11].mxu0 }
 0x41f   :  { %540 = dma.done.wait [#allocation4], 256  }
 0x420   :  { %541 = vsyncadd [#allocation4], 4294967040 }
 0x421   :  { %388 = vsyncpa [#allocation3], 1 }
 0x422   :  { %389 = vsyncpa [#allocation6], 1 }
 0x423   :  { %390 = vsyncpa [#allocation4], 1 }

</bundles_post_ra>
